<compile_context>
chip_gen: v6e
topology: v6e:2x2x1
jax: 0.10.0
libtpu: 0.0.40
codegen_flags: <defaults>
</compile_context>

<pallas_src>
import functools

import jax
import jax.numpy as jnp
from jax.experimental import pallas as pl
from jax.experimental.pallas import tpu as pltpu


def _round_up(x: int, m: int) -> int:
    return ((x + m - 1) // m) * m


def _focal_loss_kernel(x_ref, t_ref, a_ref, out_ref, *, gamma):
    """One (tile_n, C) tile: partial focal-loss sum accumulated into out_ref."""
    i = pl.program_id(1)  # inner ("arbitrary") tile axis; axis 0 is the TC split

    @pl.when(i == 0)
    def _init():
        out_ref[...] = jnp.zeros_like(out_ref)

    x = x_ref[...].astype(jnp.float32)        # (tile_n, C) logits (upcast in-kernel)
    t = t_ref[...]                            # (tile_n, 1) int32 class ids
    alpha_t = a_ref[...]                      # (tile_n, 1) f32 alpha[target]; 0 on padded rows

    tn, c = x.shape

    # log softmax(x)[target] via a stable log-sum-exp; the target logit is
    # selected with a where -> sum (no float one-hot materialised).
    cls_ids = jax.lax.broadcasted_iota(jnp.int32, (tn, c), 1)
    is_tgt = cls_ids == t

    m = jnp.max(x, axis=1, keepdims=True)                          # (tile_n, 1)
    lse = jnp.log(jnp.sum(jnp.exp(x - m), axis=1, keepdims=True))  # (tile_n, 1)
    x_t = jnp.sum(jnp.where(is_tgt, x, 0.0), axis=1, keepdims=True)
    log_p = (x_t - m) - lse                                        # (tile_n, 1)

    p = jnp.exp(log_p)
    d = jnp.maximum(1.0 - p, 0.0)             # clamp: rounding can give p marginally > 1

    gamma_f = float(gamma)
    if gamma_f == 2.0:
        focal = d * d                          # VPU only; no EUP pow for the default gamma
    elif gamma_f == 1.0:
        focal = d
    elif gamma_f == 0.0:
        focal = jnp.ones_like(d)
    else:
        focal = jnp.power(d, jnp.float32(gamma_f))

    batch_loss = -alpha_t * focal * log_p                          # (tile_n, 1)
    tile_sum = jnp.sum(batch_loss, axis=(0, 1), keepdims=True)     # (1, 1)
    out_ref[...] += tile_sum.reshape(1, 1, 1)


def focal_loss(inputs, targets, alpha=None, gamma=2.0, size_average=True,
               max_tile_rows=None):
    """JAX/Pallas equivalent of FocalLoss.forward.

    inputs:  (N, C) float32 or bfloat16 logits
    targets: (N,)   int class indices
    alpha:   (C,) or (C, 1) float32 per-class weights (defaults to ones)
    """
    n, c = inputs.shape
    itemsize = jnp.dtype(inputs.dtype).itemsize

    if alpha is None:
        alpha_vec = jnp.ones((c,), dtype=jnp.float32)
    else:
        alpha_vec = jnp.asarray(alpha, dtype=jnp.float32).reshape(-1)

    targets2d = targets.reshape(n, 1).astype(jnp.int32)
    # Host-side gather of alpha[target]; padded rows will get alpha 0 => 0 loss.
    alpha_t = alpha_vec[targets2d[:, 0]].reshape(n, 1)

    # ---------------- tiling -------------------------------------------------
    granule = max(8, 32 // max(1, itemsize))     # 8 rows f32 / 16 bf16 / 32 int8
    cpad = _round_up(c, 128)                     # lane-padded working width

    # Per-row VMEM cost (bytes): double-buffered logits tile in the caller
    # dtype + ~6 lane-padded 32-bit temporaries + the lane-padded (tile_n, 1)
    # targets/alpha tiles (double-buffered).
    per_row_vmem = cpad * (2 * itemsize + 6 * 4) + 2 * 2 * 128 * 4
    vmem_budget = 32 * 1024 * 1024               # safe on v5e / v6e / v7x
    rows = max(granule, (vmem_budget // per_row_vmem) // granule * granule)
    if max_tile_rows is not None:
        rows = max(granule, (min(rows, int(max_tile_rows)) // granule) * granule)

    # Split the batch across the two v7x TensorCores whenever there is more
    # than one tile of work (harmless serial loop on single-TC v5e/v6e).
    splits = 2 if n > rows else 1
    rows_per_split = _round_up(-(-n // splits), granule)
    tile_n = min(rows, rows_per_split)

    padded_n = _round_up(n, splits * tile_n)
    tiles_per_split = padded_n // (splits * tile_n)

    x = inputs  # keep caller dtype on the HBM side (bf16 pays half the traffic)
    if padded_n != n:
        pad = padded_n - n
        x = jnp.pad(x, ((0, pad), (0, 0)))
        targets2d = jnp.pad(targets2d, ((0, pad), (0, 0)))
        alpha_t = jnp.pad(alpha_t, ((0, pad), (0, 0)))   # zeros => padded rows contribute 0

    vmem_limit = int(min(max(2 * tile_n * per_row_vmem + (2 << 20), 32 << 20),
                         56 << 20))              # stay under v7x's 64 MiB physical

    kernel = functools.partial(_focal_loss_kernel, gamma=float(gamma))

    def row_block(p, i):
        return (p * tiles_per_split + i, 0)

    partials = pl.pallas_call(
        kernel,
        out_shape=jax.ShapeDtypeStruct((splits, 1, 1), jnp.float32),
        grid=(splits, tiles_per_split),
        in_specs=[
            pl.BlockSpec((tile_n, c), row_block),    # logits tile
            pl.BlockSpec((tile_n, 1), row_block),    # target ids
            pl.BlockSpec((tile_n, 1), row_block),    # alpha[target]
        ],
        out_specs=pl.BlockSpec((1, 1, 1), lambda p, i: (p, 0, 0)),  # per-core partial sum
        compiler_params=pltpu.CompilerParams(
            dimension_semantics=("parallel", "arbitrary"),
            vmem_limit_bytes=vmem_limit),
    )(x, targets2d, alpha_t)

    total = jnp.sum(partials)
    if size_average:
        total = total / jnp.float32(n)
    return total


def _reference_focal_loss(inputs, targets, alpha, gamma, size_average):
    x = inputs.astype(jnp.float32)
    p = jax.nn.softmax(x, axis=1)
    n, c = x.shape
    one_hot = jax.nn.one_hot(targets, c, dtype=jnp.float32)
    probs = jnp.sum(p * one_hot, axis=1)
    a = jnp.asarray(alpha, dtype=jnp.float32).reshape(-1)[targets]
    batch_loss = -a * (1.0 - probs) ** gamma * jnp.log(probs)
    return jnp.mean(batch_loss) if size_average else jnp.sum(batch_loss)


if __name__ == "__main__":
    key = jax.random.PRNGKey(0)
    k_x, k_t = jax.random.split(key)

    # Small (N, C) logits consistent with the module's forward.
    N, C = 8, 4
    inputs = jax.random.normal(k_x, (N, C), dtype=jnp.float32)
    targets = jax.random.randint(k_t, (N,), 0, C, dtype=jnp.int32)
    alpha = jnp.ones((C,), dtype=jnp.float32)    # FocalLoss(alpha=None) default
    gamma = 2.0

    loss = focal_loss(inputs, targets, alpha=alpha, gamma=gamma, size_average=True)
    loss = jax.block_until_ready(loss)
    ref = _reference_focal_loss(inputs, targets, alpha, gamma, True)
    assert jnp.allclose(loss, ref, rtol=1e-5, atol=1e-6), (loss, ref)

    # Multi-tile, non-divisible batch: exercises the 2-way TensorCore split,
    # grid > 1, zero-alpha batch padding and size_average=False.
    N2, C2 = 2500, 37
    k_x2, k_t2 = jax.random.split(jax.random.PRNGKey(1))
    inputs2 = jax.random.normal(k_x2, (N2, C2), dtype=jnp.float32)
    targets2 = jax.random.randint(k_t2, (N2,), 0, C2, dtype=jnp.int32)
    alpha2 = jax.random.uniform(jax.random.PRNGKey(2), (C2,), dtype=jnp.float32)

    loss2 = focal_loss(inputs2, targets2, alpha=alpha2, gamma=gamma,
                       size_average=False, max_tile_rows=512)
    loss2 = jax.block_until_ready(loss2)
    ref2 = _reference_focal_loss(inputs2, targets2, alpha2, gamma, False)
    assert jnp.allclose(loss2, ref2, rtol=1e-3, atol=1e-2), (loss2, ref2)

    # bf16 logits path: 16-row sublane granule, in-kernel upcast to f32.
    N3, C3 = 300, 16
    k_x3, k_t3 = jax.random.split(jax.random.PRNGKey(3))
    inputs3 = jax.random.normal(k_x3, (N3, C3), dtype=jnp.float32).astype(jnp.bfloat16)
    targets3 = jax.random.randint(k_t3, (N3,), 0, C3, dtype=jnp.int32)

    loss3 = focal_loss(inputs3, targets3, alpha=None, gamma=gamma, size_average=True)
    loss3 = jax.block_until_ready(loss3)
    ref3 = _reference_focal_loss(inputs3, targets3, jnp.ones((C3,), jnp.float32),
                                 gamma, True)
    assert jnp.allclose(loss3, ref3, rtol=1e-3, atol=1e-3), (loss3, ref3)

    print("KERNEL_OK")
</pallas_src>

<mosaic_0001>
module attributes {stable_mosaic.version = 11 : i64} {
  func.func @_focal_loss_kernel(%arg0: i32, %arg1: i32, %arg2: memref<8x4xf32, #tpu.memory_space<vmem>>, %arg3: memref<8x1xi32, #tpu.memory_space<vmem>>, %arg4: memref<8x1xf32, #tpu.memory_space<vmem>>, %arg5: memref<1x1x1xf32, #tpu.memory_space<vmem>>) attributes {dimension_semantics = [#tpu.dimension_semantics<parallel>, #tpu.dimension_semantics<arbitrary>], iteration_bounds = array<i64: 1, 1>, scalar_prefetch = 0 : i64, scratch_operands = 0 : i64, tpu.core_type = #tpu.core_type<tc>, window_params = [{transform_indices = @transform_0, window_bounds = array<i64: 8, 4>}, {transform_indices = @transform_1, window_bounds = array<i64: 8, 1>}, {transform_indices = @transform_2, window_bounds = array<i64: 8, 1>}, {transform_indices = @transform_3, window_bounds = array<i64: 1, 1, 1>}]} {
    %c0_i32 = arith.constant 0 : i32
    %0 = arith.cmpi eq, %arg1, %c0_i32 : i32
    %1 = arith.extui %0 : i1 to i32
    %c0_i32_0 = arith.constant 0 : i32
    %2 = arith.cmpi ne, %1, %c0_i32_0 : i32
    scf.if %2 {
      %cst_19 = arith.constant 0.000000e+00 : f32
      %42 = vector.broadcast %cst_19 : f32 to vector<1x1x1xf32>
      %c0_20 = arith.constant 0 : index
      %c0_21 = arith.constant 0 : index
      %c0_22 = arith.constant 0 : index
      %43 = vector.load %arg5[%c0_20, %c0_21, %c0_22] : memref<1x1x1xf32, #tpu.memory_space<vmem>>, vector<1x1x1xf32>
      tpu.vector_store %arg5[%c0_20, %c0_21, %c0_22], %42 {strides = array<i32>} : memref<1x1x1xf32, #tpu.memory_space<vmem>>, vector<1x1x1xf32>,
    } else {
    }
    %c0 = arith.constant 0 : index
    %c0_1 = arith.constant 0 : index
    %3 = vector.load %arg2[%c0, %c0_1] : memref<8x4xf32, #tpu.memory_space<vmem>>, vector<8x4xf32>
    %c0_2 = arith.constant 0 : index
    %c0_3 = arith.constant 0 : index
    %4 = vector.load %arg3[%c0_2, %c0_3] : memref<8x1xi32, #tpu.memory_space<vmem>>, vector<8x1xi32>
    %c0_4 = arith.constant 0 : index
    %c0_5 = arith.constant 0 : index
    %5 = vector.load %arg4[%c0_4, %c0_5] : memref<8x1xf32, #tpu.memory_space<vmem>>, vector<8x1xf32>
    %6 = tpu.iota {dimensions = array<i32: 1>} : vector<8x4xi32>
    %7 = vector.broadcast %4 : vector<8x1xi32> to vector<8x4xi32>
    %8 = arith.cmpi eq, %6, %7 : vector<8x4xi32>
    %cst = arith.constant dense<0xFF800000> : vector<8xf32>
    %9 = vector.multi_reduction <maximumf>, %3, %cst [1] : vector<8x4xf32> to vector<8xf32>
    %10 = vector.shape_cast %9 : vector<8xf32> to vector<8x1xf32>
    %11 = vector.broadcast %10 : vector<8x1xf32> to vector<8x4xf32>
    %12 = arith.subf %3, %11 : vector<8x4xf32>
    %13 = math.exp %12 : vector<8x4xf32>
    %cst_6 = arith.constant dense<0.000000e+00> : vector<8xf32>
    %14 = vector.multi_reduction <add>, %13, %cst_6 [1] : vector<8x4xf32> to vector<8xf32>
    %15 = vector.shape_cast %14 : vector<8xf32> to vector<8x1xf32>
    %16 = math.log %15 : vector<8x1xf32>
    %cst_7 = arith.constant 0.000000e+00 : f32
    %17 = vector.broadcast %cst_7 : f32 to vector<8x4xf32>
    %18 = arith.select %8, %3, %17 : vector<8x4xi1>, vector<8x4xf32>
    %cst_8 = arith.constant dense<0.000000e+00> : vector<8xf32>
    %19 = vector.multi_reduction <add>, %18, %cst_8 [1] : vector<8x4xf32> to vector<8xf32>
    %20 = vector.shape_cast %19 : vector<8xf32> to vector<8x1xf32>
    %21 = arith.subf %20, %10 : vector<8x1xf32>
    %22 = arith.subf %21, %16 : vector<8x1xf32>
    %23 = math.exp %22 : vector<8x1xf32>
    %cst_9 = arith.constant 1.000000e+00 : f32
    %24 = vector.broadcast %cst_9 : f32 to vector<8x1xf32>
    %25 = arith.subf %24, %23 : vector<8x1xf32>
    %cst_10 = arith.constant 0.000000e+00 : f32
    %26 = vector.broadcast %cst_10 : f32 to vector<8x1xf32>
    %27 = arith.maximumf %25, %26 : vector<8x1xf32>
    %28 = arith.mulf %27, %27 : vector<8x1xf32>
    %cst_11 = arith.constant 0.000000e+00 : f32
    %29 = vector.broadcast %cst_11 : f32 to vector<8x1xf32>
    %30 = arith.subf %29, %5 : vector<8x1xf32>
    %31 = arith.mulf %30, %28 : vector<8x1xf32>
    %32 = arith.mulf %31, %22 : vector<8x1xf32>
    %33 = vector.shape_cast %32 : vector<8x1xf32> to vector<1x8x1xf32>
    %cst_12 = arith.constant dense<0.000000e+00> : vector<1xf32>
    %34 = vector.multi_reduction <add>, %33, %cst_12 [1, 2] : vector<1x8x1xf32> to vector<1xf32>
    %35 = vector.shape_cast %34 : vector<1xf32> to vector<1x1x1xf32>
    %36 = vector.extract %35[0, 0, 0] : f32 from vector<1x1x1xf32>
    %37 = vector.broadcast %36 : f32 to vector<1x1xf32>
    %c0_13 = arith.constant 0 : index
    %c0_14 = arith.constant 0 : index
    %c0_15 = arith.constant 0 : index
    %38 = vector.load %arg5[%c0_13, %c0_14, %c0_15] : memref<1x1x1xf32, #tpu.memory_space<vmem>>, vector<1x1x1xf32>
    %39 = vector.shape_cast %37 : vector<1x1xf32> to vector<1x1x1xf32>
    %40 = arith.addf %38, %39 : vector<1x1x1xf32>
    %c0_16 = arith.constant 0 : index
    %c0_17 = arith.constant 0 : index
    %c0_18 = arith.constant 0 : index
    %41 = vector.load %arg5[%c0_16, %c0_17, %c0_18] : memref<1x1x1xf32, #tpu.memory_space<vmem>>, vector<1x1x1xf32>
    tpu.vector_store %arg5[%c0_16, %c0_17, %c0_18], %40 {strides = array<i32>} : memref<1x1x1xf32, #tpu.memory_space<vmem>>, vector<1x1x1xf32>,
    return
  }
  func.func @transform_0(%arg0: i32, %arg1: i32) -> (i32, i32) {
    %c1_i32 = arith.constant 1 : i32
    %0 = arith.muli %arg0, %c1_i32 : i32
    %1 = arith.addi %0, %arg1 : i32
    %c0_i32 = arith.constant 0 : i32
    %c0_i32_0 = arith.constant 0 : i32
    return %1, %c0_i32 : i32, i32
  }
  func.func @transform_1(%arg0: i32, %arg1: i32) -> (i32, i32) {
    %c1_i32 = arith.constant 1 : i32
    %0 = arith.muli %arg0, %c1_i32 : i32
    %1 = arith.addi %0, %arg1 : i32
    %c0_i32 = arith.constant 0 : i32
    %c0_i32_0 = arith.constant 0 : i32
    return %1, %c0_i32 : i32, i32
  }
  func.func @transform_2(%arg0: i32, %arg1: i32) -> (i32, i32) {
    %c1_i32 = arith.constant 1 : i32
    %0 = arith.muli %arg0, %c1_i32 : i32
    %1 = arith.addi %0, %arg1 : i32
    %c0_i32 = arith.constant 0 : i32
    %c0_i32_0 = arith.constant 0 : i32
    return %1, %c0_i32 : i32, i32
  }
  func.func @transform_3(%arg0: i32, %arg1: i32) -> (i32, i32, i32) {
    %c0_i32 = arith.constant 0 : i32
    %c0_i32_0 = arith.constant 0 : i32
    %c0_i32_1 = arith.constant 0 : i32
    return %arg0, %c0_i32, %c0_i32_0 : i32, i32, i32
  }
}

</mosaic_0001>

<bundles_post_ra>
// kernel: tpu_custom_call.1
= control target key start
LH: loop header
LB: loop body
LE: loop exit
PB: predicated region body
PF: predicated region fallthrough
CT: control target
= control target key end

     0   :  { %vm81_vm0 = vcmask 31744   ;;  %s229_s0 = inlined_call_operand.vmem [shape: f32[8,4], index: 0, kind: input, shape index: {}]   ;;  %s230_s1 = inlined_call_operand.vmem [shape: s32[8,1], index: 1, kind: input, shape index: {}]   ;;  %s231_s2 = inlined_call_operand.vmem [shape: f32[8,1], index: 2, kind: input, shape index: {}]   ;;  %s232_s3 = inlined_call_operand.hbm [shape: f32[1,1,1], index: 3, kind: output, shape index: {}]  }
   0x1   :  { %v72_v0 = vld [vmem:[%s229_s0] sm:$0xff] }
   0x2   :  { %8 = vsyncpa [#allocation3], 0  ;;  %v82_v1 = vsel %vm81_vm0, %v72_v0, -inf  ;;  %v189_v2 = vmov 0   ;;  %v73_v3 = vld [vmem:[%s230_s1] sm:$0xff]  ;;  %v75_v7 = vlaneseq  ;;  %vm107_vm2 = vcmask 7168  }
   0x3   :  { %160 = vset.pattern.permute.xlu0 %v189_v2  ;;  %v74_v22 = vld [vmem:[%s231_s2] sm:$0xff]  ;;  %vm70_vm3 = vcmask 0   ;;  %v190_v30 = vmov 0.0   ;;  %s191_s2 = smov [#allocation2]  }
   0x4   :  { %83 = vmax.xlane.f32.xlu0 %v82_v1  ;;  %v76_v8 = vand.u32 127, %v75_v7  ;;  %v104_v25 = vsub.f32 0.0, %v74_v22  ;;  %71 = vst.msk [vmem:[#allocation2] sm:$0x1] %vm70_vm3, %v190_v30  ;;  %s129_s16 = sshll.u32 %s191_s2, 4  ;;  %s130_s16 = int_to_ptr.vmem [resolvable:$true] %s129_s16 }
   0x5   :  { %s167_s18 = scalar_lea.vmem %s130_s16, 16  ;;  %s171_s19 = scalar_lea.vmem %s130_s16, 32 }
   0x6   :  { %p168_p0 = scmp.ne.s32.totalorder %s130_s16, %s167_s18  ;;  %p172_p1 = scmp.lt.s32.totalorder %s130_s16, %s130_s16 }
   0x7   :  { %p173_p2 = scmp.lt.s32.totalorder %s171_s19, %s167_s18 }
   0x9   :  { %p174_p3 = por %p173_p2, %p172_p1 }
   0xb   :  { %v118_v38 = vld [vmem:[#allocation2] sm:$0x1]  ;;  %p175_p4 = pnand %p174_p3, %p168_p0 }
  0x1a   :  { %78 = vperm.xlu0 %160, %v73_v3  }
  0x8d   :  { %v84_v4 = vpop.xlane.xlu0 %83 }
  0x8e   :  { %v85_v5 = vsub.f32 %v72_v0, %v84_v4 }
  0x90   :  { %v86_v6 = vmul.f32 1.442695, %v85_v5 }
  0x92   :  { %161 = vpow2.f32 %v86_v6 }
  0x95   :  { %v79_v9 = vpop.permute.xlu0 %78 }
  0x96   :  { %vm80_vm1 = vcmp.eq.s32.totalorder %v76_v8, %v79_v9 }
  0x97   :  { %v93_v11 = vsel %vm80_vm1, %v72_v0, 0.0 }
  0x98   :  { %v94_v13 = vsel %vm81_vm0, %v93_v11, 0.0 }
  0x9f   :  { %v162_v10 = vpop.eup %161 }
  0xa0   :  { %v88_v12 = vsel %vm81_vm0, %v162_v10, 0.0 }
  0xa1   :  { %89 = vadd.xlane.f32.xlu1 %v88_v12 }
  0xa5   :  { %95 = vadd.xlane.f32.xlu1 %v94_v13 }
 0x12a   :  { %v90_v14 = vpop.xlane.xlu1 %89 }
 0x12b   :  { %163 = vlog2.f32 %v90_v14 }
 0x12e   :  { %v96_v15 = vpop.xlane.xlu1 %95 }
 0x12f   :  { %v97_v18 = vsub.f32 %v96_v15, %v84_v4 }
 0x138   :  { %v164_v16 = vpop.eup %163 }
 0x139   :  { %v92_v17 = vmul.f32 0.6931472, %v164_v16 }
 0x13b   :  { %v98_v19 = vsub.f32 %v97_v18, %v92_v17 }
 0x13d   :  { %v99_v20 = vmul.f32 1.442695, %v98_v19 }
 0x13f   :  { %165 = vpow2.f32 %v99_v20 }
 0x14c   :  { %v166_v21 = vpop.eup %165 }
 0x14d   :  { %v101_v23 = vsub.f32 1.0, %v166_v21 }
 0x14f   :  { %v102_v24 = vmax.f32 %v101_v23, 0.0 }
 0x151   :  { %v103_v26 = vmul.f32 %v102_v24, %v102_v24 }
 0x153   :  { %v105_v27 = vmul.f32 %v104_v25, %v103_v26 }
 0x155   :  { %v106_v28 = vmul.f32 %v105_v27, %v98_v19 }
 0x157   :  { %v108_v29 = vsel %vm107_vm2, %v106_v28, 0.0 }
 0x158   :  { %109 = vadd.xlane.f32.xlu1 %v108_v29 }
 0x1e1   :  { %v110_v31 = vpop.xlane.xlu1 %109 }
 0x1e2   :  { %v111_v32 = vrot.slane %v110_v31, 4 }
 0x1e4   :  { %v112_v33 = vadd.f32 %v111_v32, %v110_v31 }
 0x1e6   :  { %v113_v34 = vrot.slane %v112_v33, 2 }
 0x1e8   :  { %v114_v35 = vadd.f32 %v113_v34, %v112_v33 }
 0x1ea   :  { %v115_v36 = vrot.slane %v114_v35, 1 }
 0x1ec   :  { %v116_v37 = vadd.f32 %v115_v36, %v114_v35 }
 0x1ee   :  { %155 = vpush %v116_v37 }
 0x21f   :  { %s156_s17 = spop %155 }
 0x220   :  { %v119_v39 = vstv %s156_s17 }
 0x221   :  { %v120_v40 = vadd.f32 %v119_v39, %v118_v38 }
 0x223   :  { %122 = vst.msk [vmem:[#allocation2] sm:$0x1] %vm70_vm3, %v120_v40 }
 0x224   :  { %178 = shalt.err (!%p175_p4)
}
 0x225   :  { %132 = dma.vmem_to_hbm [thread:$0]  %s130_s16, 16, %s232_s3, [#allocation3]  }
 0x226   :  { %187 = dma.done.wait [#allocation3], 16  }
 0x227   :  { %188 = vsyncadd [#allocation3], 4294967280 }
 0x228   :  { %136 = vsyncpa [#allocation3], 1 }

</bundles_post_ra>
